<compile_context>
chip_gen: v6e
topology: v6e:2x2x1
jax: 0.10.0
libtpu: 0.0.40
codegen_flags: <defaults>
</compile_context>

<pallas_src>
import functools

import numpy as np
import jax
import jax.numpy as jnp
from jax import lax
from jax.experimental import pallas as pl
from jax.experimental.pallas import tpu as pltpu


# ----------------------------------------------------------------- tile picks
def _pick_tile(n, cap=512):
    """Largest power-of-two tile <= cap that divides n (down to 128), else n."""
    if n <= cap:
        return n
    t = cap
    while t >= 128:
        if n % t == 0:
            return t
        t //= 2
    return n  # TODO(synk): ragged N falls back to a single un-tiled block.


# ------------------------------------------------------------------ kernel 1
def _pairwise_dist_kernel(xa_ref, xb_ref, sqa_ref, sqb_ref, o_ref, *,
                          mask_self, tm, tn):
    xa = xa_ref[...]                                     # (tm, D)
    xb = xb_ref[...]                                     # (tn, D)
    # Gram tile: contract the last dims of both operands (MXU-native, no x.T).
    gram = lax.dot_general(xa, xb, (((1,), (1,)), ((), ())),
                           preferred_element_type=jnp.float32)   # (tm, tn)
    dist = sqa_ref[...] + sqb_ref[...] - 2.0 * gram      # ||a||^2+||b||^2-2ab
    if mask_self:
        i = pl.program_id(0)
        j = pl.program_id(1)
        row = i * tm + lax.broadcasted_iota(jnp.int32, (tm, tn), 0)
        col = j * tn + lax.broadcasted_iota(jnp.int32, (tm, tn), 1)
        dist = jnp.where(row == col, jnp.inf, dist)      # exclude self match
    o_ref[...] = dist


def pairwise_sq_dists(x, mask_self, gram_dtype=jnp.float32):
    # TODO(synk): for very large N a streaming (distance + running top-k)
    # fusion would avoid materializing the N x N matrix in HBM.
    n, d = x.shape
    x = x.astype(jnp.float32)
    sq = jnp.sum(x * x, axis=-1)                         # f32 squared norms
    sq_col = sq.reshape(n, 1)
    sq_row = sq.reshape(1, n)
    # gram_dtype=jnp.bfloat16 doubles MXU rate but can flip near-tied neighbor
    # ordering; keep f32 by default (squared-norm correction stays f32 always).
    xg = x.astype(gram_dtype)
    tm = tn = _pick_tile(n, cap=512)   # 512 cap keeps double-buffers in v7x VMEM
    kern = functools.partial(_pairwise_dist_kernel,
                             mask_self=mask_self, tm=tm, tn=tn)
    return pl.pallas_call(
        kern,
        grid=(n // tm, n // tn),
        in_specs=[pl.BlockSpec((tm, d), lambda i, j: (i, 0)),
                  pl.BlockSpec((tn, d), lambda i, j: (j, 0)),
                  pl.BlockSpec((tm, 1), lambda i, j: (i, 0)),
                  pl.BlockSpec((1, tn), lambda i, j: (0, j))],
        out_specs=pl.BlockSpec((tm, tn), lambda i, j: (i, j)),
        out_shape=jax.ShapeDtypeStruct((n, n), jnp.float32),
        compiler_params=pltpu.CompilerParams(
            dimension_semantics=("parallel", "parallel"),
            vmem_limit_bytes=48 * 1024 * 1024),
    )(xg, xg, sq_col, sq_row)


# ------------------------------------------------------------------ kernel 2
def _hits_metrics_kernel(nbr_ref, own_ref, o_ref, *, k, r_eff):
    nbr = nbr_ref[...]                                   # (r, tn) int32
    own = own_ref[...]                                   # (1, tn) int32
    hits = (nbr == own).astype(jnp.float32)              # lane-dense compare
    r = hits.shape[0]

    # recall@1 : nearest (non-self) neighbor is a class match
    recall1 = hits[0:1, :]

    # cumulative hits over neighbor rank via small lower-triangular matmul
    row = lax.broadcasted_iota(jnp.int32, (r, r), 0)
    col = lax.broadcasted_iota(jnp.int32, (r, r), 1)
    tri = (col <= row).astype(jnp.float32)               # tri[i, j] = [j <= i]
    cum = jnp.dot(tri, hits, preferred_element_type=jnp.float32)   # (r, tn)

    # recall@k : at least one match within the first k neighbors
    recallk = jnp.minimum(cum[k - 1:k, :], 1.0)

    # MAP@R : average precision over the first r_eff neighbors
    ranks = (lax.broadcasted_iota(jnp.int32, (r, 1), 0) + 1).astype(jnp.float32)
    prec = cum / ranks
    mapr = jnp.sum(prec * hits, axis=0, keepdims=True) * (1.0 / float(r_eff))

    o_ref[0:1, :] = recall1
    o_ref[1:2, :] = recallk
    o_ref[2:3, :] = mapr


def hits_metrics(nbr_classes, own_classes, k, r_eff):
    r, n = nbr_classes.shape
    tn = _pick_tile(n, cap=4096)
    kern = functools.partial(_hits_metrics_kernel, k=k, r_eff=r_eff)
    out = pl.pallas_call(
        kern,
        grid=(n // tn,),
        in_specs=[pl.BlockSpec((r, tn), lambda i: (0, i)),
                  pl.BlockSpec((1, tn), lambda i: (0, i))],
        out_specs=pl.BlockSpec((3, tn), lambda i: (0, i)),
        out_shape=jax.ShapeDtypeStruct((3, n), jnp.float32),
        compiler_params=pltpu.CompilerParams(
            dimension_semantics=("parallel",)),
    )(nbr_classes, own_classes)
    return out[0], out[1], out[2]


# ------------------------------------------------------------------ kernel 3
def _reductions_kernel(pa_ref, pb_ref, err_ref, w_ref, o_ref, *, n):
    inv_n = 1.0 / float(n)

    # --- two Pearson correlations (rowwise on (2, N)) ------------------------
    a = pa_ref[...]
    b = pb_ref[...]
    ma = jnp.sum(a, axis=-1, keepdims=True) * inv_n
    mb = jnp.sum(b, axis=-1, keepdims=True) * inv_n
    da = a - ma
    db = b - mb
    cov = jnp.sum(da * db, axis=-1, keepdims=True)
    va = jnp.sum(da * da, axis=-1, keepdims=True)
    vb = jnp.sum(db * db, axis=-1, keepdims=True)
    corr = cov * lax.rsqrt(va * vb + 1e-12)              # (2, 1)

    # --- two ERC / AURC scores ----------------------------------------------
    # err rows are per-sample errors sorted by DESCENDING confidence.
    # mean_i [ (1/(i+1)) * sum_{j<=i} err_j ] == (1/N) * sum_j err_j * w_j
    # with w_j = H_N - H_j (harmonic tail), precomputed on host.
    aurc = jnp.sum(err_ref[...] * w_ref[...], axis=-1, keepdims=True) * inv_n

    o_ref[0:2, :] = corr
    o_ref[2:4, :] = aurc


def fused_reductions(pa, pb, errs, w):
    _, n = pa.shape
    return pl.pallas_call(
        functools.partial(_reductions_kernel, n=n),
        grid=(1,),
        in_specs=[pl.BlockSpec((2, n), lambda i: (0, 0)),
                  pl.BlockSpec((2, n), lambda i: (0, 0)),
                  pl.BlockSpec((2, n), lambda i: (0, 0)),
                  pl.BlockSpec((1, n), lambda i: (0, 0))],
        out_specs=pl.BlockSpec((4, 1), lambda i: (0, 0)),
        out_shape=jax.ShapeDtypeStruct((4, 1), jnp.float32),
    )(pa, pb, errs, w)


# --------------------------------------------------------------- forward pass
@functools.partial(jax.jit, static_argnames=("k", "r_search", "ignore_self"))
def _uncertainty_metrics_jit(d, c, confs, gt_confs, *, k, r_search, ignore_self):
    n = d.shape[0]

    # FAISS IndexFlat add + search == exact L2 kNN over the whole batch.
    dists = pairwise_sq_dists(d, mask_self=ignore_self)        # Pallas kernel 1
    r_eff = r_search - 1 if ignore_self else r_search
    _, inds = lax.top_k(-dists, r_eff)                         # kNN selection

    # get_binary_hits + per-sample metrics, transposed lane-dense (r, N) layout
    nbr_classes = jnp.take(c.astype(jnp.int32), inds.T, axis=0)    # (r_eff, N)
    own_classes = c.reshape(1, n).astype(jnp.int32)
    k_eff = max(1, min(int(k), r_eff))
    recall1, recallk, mapr = hits_metrics(nbr_classes, own_classes,
                                          k_eff, r_eff)        # Pallas kernel 2

    # Spearman rank correlation = Pearson on ranks (no tie averaging).
    confs_f = confs.astype(jnp.float32)
    ranks_c = jnp.argsort(jnp.argsort(confs_f)).astype(jnp.float32)
    ranks_g = jnp.argsort(jnp.argsort(gt_confs.astype(jnp.float32))
                          ).astype(jnp.float32)

    # ERC inputs: per-sample error sorted by descending confidence (one sort).
    order = jnp.argsort(-confs_f)
    errs = jnp.stack([1.0 - recallk[order], 1.0 - mapr[order]], axis=0)
    # harmonic-tail weights (static N -> trace-time numpy constant)
    w_np = np.flip(np.cumsum(np.flip(1.0 / np.arange(1, n + 1, dtype=np.float64))))
    w = jnp.asarray(w_np.astype(np.float32)).reshape(1, n)

    # TODO(synk): conf_vs_recall@1 and erc_vs_* exact definitions are not in
    # the reference source; correlation-with-hits and AURC are used as
    # standard stand-ins (same as previous version).
    pa = jnp.stack([confs_f, ranks_c], axis=0)
    pb = jnp.stack([recall1, ranks_g], axis=0)
    stats = fused_reductions(pa, pb, errs, w)                  # Pallas kernel 3

    return {
        'conf_vs_recall@1': stats[0, 0],
        'rcorr': stats[1, 0],
        f'erc_vs_recall@{k}': stats[2, 0],
        'erc_vs_map@r': stats[3, 0],
    }


def uncertainty_metrics_forward(d, c, confs, gt_confs, k, r=None,
                                ignore_self=True):
    # sizes_per_class + r selection (host, once) -- keeps the hot path jittable
    if r is None:
        counts = np.bincount(np.asarray(jax.device_get(c)).astype(np.int64))
        counts = counts[counts > 0]
        r_search = int(counts.min()) - 1
    else:
        r_search = int(r)
    if ignore_self:
        r_search += 1
    return _uncertainty_metrics_jit(
        jnp.asarray(d, dtype=jnp.float32), jnp.asarray(c),
        jnp.asarray(confs), jnp.asarray(gt_confs),
        k=int(k), r_search=int(r_search), ignore_self=bool(ignore_self))


# -------------------------------------------------------------------- driver
if __name__ == "__main__":
    key = jax.random.PRNGKey(0)
    k1, k2, k3, k4 = jax.random.split(key, 4)

    n_classes, per_class, dim = 4, 8, 32
    N = n_classes * per_class                    # 32 samples

    c = jnp.repeat(jnp.arange(n_classes, dtype=jnp.int32), per_class)   # (32,)
    centers = jax.random.normal(k1, (n_classes, dim), dtype=jnp.float32)
    d = centers[c] + 0.6 * jax.random.normal(k2, (N, dim), dtype=jnp.float32)

    confs = jax.random.uniform(k3, (N,), dtype=jnp.float32)
    gt_confs = jnp.clip(
        confs + 0.2 * jax.random.normal(k4, (N,), dtype=jnp.float32), 0.0, 1.0)

    k = 4
    results = uncertainty_metrics_forward(d, c, confs, gt_confs, k,
                                          r=None, ignore_self=True)
    jax.block_until_ready(results)
    print("KERNEL_OK")
</pallas_src>

<mosaic_0001>
module attributes {stable_mosaic.version = 11 : i64} {
  func.func @_pairwise_dist_kernel(%arg0: i32, %arg1: i32, %arg2: memref<32x32xf32, #tpu.memory_space<vmem>>, %arg3: memref<32x32xf32, #tpu.memory_space<vmem>>, %arg4: memref<32x1xf32, #tpu.memory_space<vmem>>, %arg5: memref<1x32xf32, #tpu.memory_space<vmem>>, %arg6: memref<32x32xf32, #tpu.memory_space<vmem>>) attributes {dimension_semantics = [#tpu.dimension_semantics<parallel>, #tpu.dimension_semantics<parallel>], iteration_bounds = array<i64: 1, 1>, scalar_prefetch = 0 : i64, scratch_operands = 0 : i64, tpu.core_type = #tpu.core_type<tc>, window_params = [{transform_indices = @transform_0, window_bounds = array<i64: 32, 32>}, {transform_indices = @transform_1, window_bounds = array<i64: 32, 32>}, {transform_indices = @transform_2, window_bounds = array<i64: 32, 1>}, {transform_indices = @transform_3, window_bounds = array<i64: 1, 32>}, {transform_indices = @transform_4, window_bounds = array<i64: 32, 32>}]} {
    %c0 = arith.constant 0 : index
    %c0_0 = arith.constant 0 : index
    %0 = vector.load %arg2[%c0, %c0_0] : memref<32x32xf32, #tpu.memory_space<vmem>>, vector<32x32xf32>
    %c0_1 = arith.constant 0 : index
    %c0_2 = arith.constant 0 : index
    %1 = vector.load %arg3[%c0_1, %c0_2] : memref<32x32xf32, #tpu.memory_space<vmem>>, vector<32x32xf32>
    %cst = arith.constant dense<0.000000e+00> : vector<32x32xf32>
    %2 = tpu.matmul %0, %1, %cst {dimension_numbers = #tpu.dot_dimension_numbers<[1], [1], [0], [0], [0, 0, 1, 0], [], []>} : vector<32x32xf32>, vector<32x32xf32>, vector<32x32xf32> -> vector<32x32xf32>
    %c0_3 = arith.constant 0 : index
    %c0_4 = arith.constant 0 : index
    %3 = vector.load %arg4[%c0_3, %c0_4] : memref<32x1xf32, #tpu.memory_space<vmem>>, vector<32x1xf32>
    %c0_5 = arith.constant 0 : index
    %c0_6 = arith.constant 0 : index
    %4 = vector.load %arg5[%c0_5, %c0_6] : memref<1x32xf32, #tpu.memory_space<vmem>>, vector<1x32xf32>
    %5 = vector.broadcast %3 : vector<32x1xf32> to vector<32x32xf32>
    %6 = vector.broadcast %4 : vector<1x32xf32> to vector<32x32xf32>
    %7 = arith.addf %5, %6 : vector<32x32xf32>
    %cst_7 = arith.constant 2.000000e+00 : f32
    %8 = vector.broadcast %cst_7 : f32 to vector<32x32xf32>
    %9 = arith.mulf %8, %2 : vector<32x32xf32>
    %10 = arith.subf %7, %9 : vector<32x32xf32>
    %c32_i32 = arith.constant 32 : i32
    %11 = arith.muli %arg0, %c32_i32 : i32
    %12 = tpu.iota {dimensions = array<i32: 0>} : vector<32x32xi32>
    %13 = vector.broadcast %11 : i32 to vector<32x32xi32>
    %14 = arith.addi %13, %12 : vector<32x32xi32>
    %c32_i32_8 = arith.constant 32 : i32
    %15 = arith.muli %arg1, %c32_i32_8 : i32
    %16 = tpu.iota {dimensions = array<i32: 1>} : vector<32x32xi32>
    %17 = vector.broadcast %15 : i32 to vector<32x32xi32>
    %18 = arith.addi %17, %16 : vector<32x32xi32>
    %19 = arith.cmpi eq, %14, %18 : vector<32x32xi32>
    %cst_9 = arith.constant 0x7F800000 : f32
    %20 = vector.broadcast %cst_9 : f32 to vector<32x32xf32>
    %21 = arith.select %19, %20, %10 : vector<32x32xi1>, vector<32x32xf32>
    %c0_10 = arith.constant 0 : index
    %c0_11 = arith.constant 0 : index
    %22 = vector.load %arg6[%c0_10, %c0_11] : memref<32x32xf32, #tpu.memory_space<vmem>>, vector<32x32xf32>
    tpu.vector_store %arg6[%c0_10, %c0_11], %21 {strides = array<i32>} : memref<32x32xf32, #tpu.memory_space<vmem>>, vector<32x32xf32>,
    return
  }
  func.func @transform_0(%arg0: i32, %arg1: i32) -> (i32, i32) {
    %c0_i32 = arith.constant 0 : i32
    %c0_i32_0 = arith.constant 0 : i32
    return %arg0, %c0_i32 : i32, i32
  }
  func.func @transform_1(%arg0: i32, %arg1: i32) -> (i32, i32) {
    %c0_i32 = arith.constant 0 : i32
    %c0_i32_0 = arith.constant 0 : i32
    return %arg1, %c0_i32 : i32, i32
  }
  func.func @transform_2(%arg0: i32, %arg1: i32) -> (i32, i32) {
    %c0_i32 = arith.constant 0 : i32
    %c0_i32_0 = arith.constant 0 : i32
    return %arg0, %c0_i32 : i32, i32
  }
  func.func @transform_3(%arg0: i32, %arg1: i32) -> (i32, i32) {
    %c0_i32 = arith.constant 0 : i32
    %c0_i32_0 = arith.constant 0 : i32
    return %c0_i32, %arg1 : i32, i32
  }
  func.func @transform_4(%arg0: i32, %arg1: i32) -> (i32, i32) {
    %c0_i32 = arith.constant 0 : i32
    return %arg0, %arg1 : i32, i32
  }
}

module attributes {stable_mosaic.version = 11 : i64} {
  func.func @_hits_metrics_kernel(%arg0: i32, %arg1: memref<7x32xi32, #tpu.memory_space<vmem>>, %arg2: memref<1x32xi32, #tpu.memory_space<vmem>>, %arg3: memref<3x32xf32, #tpu.memory_space<vmem>>) attributes {dimension_semantics = [#tpu.dimension_semantics<parallel>], iteration_bounds = array<i64: 1>, scalar_prefetch = 0 : i64, scratch_operands = 0 : i64, tpu.core_type = #tpu.core_type<tc>, window_params = [{transform_indices = @transform_0, window_bounds = array<i64: 7, 32>}, {transform_indices = @transform_1, window_bounds = array<i64: 1, 32>}, {transform_indices = @transform_2, window_bounds = array<i64: 3, 32>}]} {
    %c0 = arith.constant 0 : index
    %c0_0 = arith.constant 0 : index
    %0 = vector.load %arg1[%c0, %c0_0] : memref<7x32xi32, #tpu.memory_space<vmem>>, vector<7x32xi32>
    %c0_1 = arith.constant 0 : index
    %c0_2 = arith.constant 0 : index
    %1 = vector.load %arg2[%c0_1, %c0_2] : memref<1x32xi32, #tpu.memory_space<vmem>>, vector<1x32xi32>
    %2 = vector.broadcast %1 : vector<1x32xi32> to vector<7x32xi32>
    %3 = arith.cmpi eq, %0, %2 : vector<7x32xi32>
    %4 = arith.extui %3 : vector<7x32xi1> to vector<7x32xi32>
    %5 = arith.sitofp %4 : vector<7x32xi32> to vector<7x32xf32>
    %6 = vector.extract_strided_slice %5 {offsets = [0, 0], sizes = [1, 32], strides = [1, 1]} : vector<7x32xf32> to vector<1x32xf32>
    %7 = tpu.iota {dimensions = array<i32: 0>} : vector<7x7xi32>
    %8 = tpu.iota {dimensions = array<i32: 1>} : vector<7x7xi32>
    %9 = arith.cmpi sle, %8, %7 : vector<7x7xi32>
    %10 = arith.extui %9 : vector<7x7xi1> to vector<7x7xi32>
    %11 = arith.sitofp %10 : vector<7x7xi32> to vector<7x7xf32>
    %cst = arith.constant dense<0.000000e+00> : vector<7x32xf32>
    %12 = tpu.matmul %11, %5, %cst {dimension_numbers = #tpu.dot_dimension_numbers<[1], [0], [0], [1], [0, 0, 1, 1], [], []>} : vector<7x7xf32>, vector<7x32xf32>, vector<7x32xf32> -> vector<7x32xf32>
    %13 = vector.extract_strided_slice %12 {offsets = [3, 0], sizes = [1, 32], strides = [1, 1]} : vector<7x32xf32> to vector<1x32xf32>
    %cst_3 = arith.constant 1.000000e+00 : f32
    %14 = vector.broadcast %cst_3 : f32 to vector<1x32xf32>
    %15 = arith.minimumf %13, %14 : vector<1x32xf32>
    %16 = tpu.iota {dimensions = array<i32: 0>} : vector<7x1xi32>
    %c1_i32 = arith.constant 1 : i32
    %17 = vector.broadcast %c1_i32 : i32 to vector<7x1xi32>
    %18 = arith.addi %16, %17 : vector<7x1xi32>
    %19 = arith.sitofp %18 : vector<7x1xi32> to vector<7x1xf32>
    %20 = vector.broadcast %19 : vector<7x1xf32> to vector<7x32xf32>
    %21 = arith.divf %12, %20 : vector<7x32xf32>
    %22 = arith.mulf %21, %5 : vector<7x32xf32>
    %cst_4 = arith.constant dense<0.000000e+00> : vector<32xf32>
    %23 = vector.multi_reduction <add>, %22, %cst_4 [0] : vector<7x32xf32> to vector<32xf32>
    %24 = vector.shape_cast %23 : vector<32xf32> to vector<1x32xf32>
    %cst_5 = arith.constant 0.142857149 : f32
    %25 = vector.broadcast %cst_5 : f32 to vector<1x32xf32>
    %26 = arith.mulf %24, %25 : vector<1x32xf32>
    %c0_6 = arith.constant 0 : index
    %c0_7 = arith.constant 0 : index
    %27 = vector.load %arg3[%c0_6, %c0_7] : memref<3x32xf32, #tpu.memory_space<vmem>>, vector<1x32xf32>
    tpu.vector_store %arg3[%c0_6, %c0_7], %6 {strides = array<i32>} : memref<3x32xf32, #tpu.memory_space<vmem>>, vector<1x32xf32>,
    %c1 = arith.constant 1 : index
    %c0_8 = arith.constant 0 : index
    %28 = vector.load %arg3[%c1, %c0_8] : memref<3x32xf32, #tpu.memory_space<vmem>>, vector<1x32xf32>
    tpu.vector_store %arg3[%c1, %c0_8], %15 {strides = array<i32>} : memref<3x32xf32, #tpu.memory_space<vmem>>, vector<1x32xf32>,
    %c2 = arith.constant 2 : index
    %c0_9 = arith.constant 0 : index
    %29 = vector.load %arg3[%c2, %c0_9] : memref<3x32xf32, #tpu.memory_space<vmem>>, vector<1x32xf32>
    tpu.vector_store %arg3[%c2, %c0_9], %26 {strides = array<i32>} : memref<3x32xf32, #tpu.memory_space<vmem>>, vector<1x32xf32>,
    return
  }
  func.func @transform_0(%arg0: i32) -> (i32, i32) {
    %c0_i32 = arith.constant 0 : i32
    %c0_i32_0 = arith.constant 0 : i32
    return %c0_i32, %arg0 : i32, i32
  }
  func.func @transform_1(%arg0: i32) -> (i32, i32) {
    %c0_i32 = arith.constant 0 : i32
    %c0_i32_0 = arith.constant 0 : i32
    return %c0_i32, %arg0 : i32, i32
  }
  func.func @transform_2(%arg0: i32) -> (i32, i32) {
    %c0_i32 = arith.constant 0 : i32
    %c0_i32_0 = arith.constant 0 : i32
    return %c0_i32, %arg0 : i32, i32
  }
}

module attributes {stable_mosaic.version = 11 : i64} {
  func.func @_reductions_kernel(%arg0: i32, %arg1: memref<2x32xf32, #tpu.memory_space<vmem>>, %arg2: memref<2x32xf32, #tpu.memory_space<vmem>>, %arg3: memref<2x32xf32, #tpu.memory_space<vmem>>, %arg4: memref<1x32xf32, #tpu.memory_space<vmem>>, %arg5: memref<4x1xf32, #tpu.memory_space<vmem>>) attributes {dimension_semantics = [#tpu.dimension_semantics<arbitrary>], iteration_bounds = array<i64: 1>, scalar_prefetch = 0 : i64, scratch_operands = 0 : i64, tpu.core_type = #tpu.core_type<tc>, window_params = [{pipeline_mode = #tpu.pipeline_mode<synchronous>, transform_indices = @transform_0, window_bounds = array<i64: 2, 32>}, {pipeline_mode = #tpu.pipeline_mode<synchronous>, transform_indices = @transform_1, window_bounds = array<i64: 2, 32>}, {pipeline_mode = #tpu.pipeline_mode<synchronous>, transform_indices = @transform_2, window_bounds = array<i64: 2, 32>}, {pipeline_mode = #tpu.pipeline_mode<synchronous>, transform_indices = @transform_3, window_bounds = array<i64: 1, 32>}, {pipeline_mode = #tpu.pipeline_mode<synchronous>, transform_indices = @transform_4, window_bounds = array<i64: 4, 1>}]} {
    %c0 = arith.constant 0 : index
    %c0_0 = arith.constant 0 : index
    %0 = vector.load %arg1[%c0, %c0_0] : memref<2x32xf32, #tpu.memory_space<vmem>>, vector<2x32xf32>
    %c0_1 = arith.constant 0 : index
    %c0_2 = arith.constant 0 : index
    %1 = vector.load %arg2[%c0_1, %c0_2] : memref<2x32xf32, #tpu.memory_space<vmem>>, vector<2x32xf32>
    %cst = arith.constant dense<0.000000e+00> : vector<2xf32>
    %2 = vector.multi_reduction <add>, %0, %cst [1] : vector<2x32xf32> to vector<2xf32>
    %3 = vector.shape_cast %2 : vector<2xf32> to vector<2x1xf32>
    %cst_3 = arith.constant 3.125000e-02 : f32
    %4 = vector.broadcast %cst_3 : f32 to vector<2x1xf32>
    %5 = arith.mulf %3, %4 : vector<2x1xf32>
    %cst_4 = arith.constant dense<0.000000e+00> : vector<2xf32>
    %6 = vector.multi_reduction <add>, %1, %cst_4 [1] : vector<2x32xf32> to vector<2xf32>
    %7 = vector.shape_cast %6 : vector<2xf32> to vector<2x1xf32>
    %cst_5 = arith.constant 3.125000e-02 : f32
    %8 = vector.broadcast %cst_5 : f32 to vector<2x1xf32>
    %9 = arith.mulf %7, %8 : vector<2x1xf32>
    %10 = vector.broadcast %5 : vector<2x1xf32> to vector<2x32xf32>
    %11 = arith.subf %0, %10 : vector<2x32xf32>
    %12 = vector.broadcast %9 : vector<2x1xf32> to vector<2x32xf32>
    %13 = arith.subf %1, %12 : vector<2x32xf32>
    %14 = arith.mulf %11, %13 : vector<2x32xf32>
    %cst_6 = arith.constant dense<0.000000e+00> : vector<2xf32>
    %15 = vector.multi_reduction <add>, %14, %cst_6 [1] : vector<2x32xf32> to vector<2xf32>
    %16 = vector.shape_cast %15 : vector<2xf32> to vector<2x1xf32>
    %17 = arith.mulf %11, %11 : vector<2x32xf32>
    %cst_7 = arith.constant dense<0.000000e+00> : vector<2xf32>
    %18 = vector.multi_reduction <add>, %17, %cst_7 [1] : vector<2x32xf32> to vector<2xf32>
    %19 = vector.shape_cast %18 : vector<2xf32> to vector<2x1xf32>
    %20 = arith.mulf %13, %13 : vector<2x32xf32>
    %cst_8 = arith.constant dense<0.000000e+00> : vector<2xf32>
    %21 = vector.multi_reduction <add>, %20, %cst_8 [1] : vector<2x32xf32> to vector<2xf32>
    %22 = vector.shape_cast %21 : vector<2xf32> to vector<2x1xf32>
    %23 = arith.mulf %19, %22 : vector<2x1xf32>
    %cst_9 = arith.constant 9.99999996E-13 : f32
    %24 = vector.broadcast %cst_9 : f32 to vector<2x1xf32>
    %25 = arith.addf %23, %24 : vector<2x1xf32>
    %26 = math.rsqrt %25 : vector<2x1xf32>
    %27 = arith.mulf %16, %26 : vector<2x1xf32>
    %c0_10 = arith.constant 0 : index
    %c0_11 = arith.constant 0 : index
    %28 = vector.load %arg3[%c0_10, %c0_11] : memref<2x32xf32, #tpu.memory_space<vmem>>, vector<2x32xf32>
    %c0_12 = arith.constant 0 : index
    %c0_13 = arith.constant 0 : index
    %29 = vector.load %arg4[%c0_12, %c0_13] : memref<1x32xf32, #tpu.memory_space<vmem>>, vector<1x32xf32>
    %30 = vector.broadcast %29 : vector<1x32xf32> to vector<2x32xf32>
    %31 = arith.mulf %28, %30 : vector<2x32xf32>
    %cst_14 = arith.constant dense<0.000000e+00> : vector<2xf32>
    %32 = vector.multi_reduction <add>, %31, %cst_14 [1] : vector<2x32xf32> to vector<2xf32>
    %33 = vector.shape_cast %32 : vector<2xf32> to vector<2x1xf32>
    %cst_15 = arith.constant 3.125000e-02 : f32
    %34 = vector.broadcast %cst_15 : f32 to vector<2x1xf32>
    %35 = arith.mulf %33, %34 : vector<2x1xf32>
    %c0_16 = arith.constant 0 : index
    %c0_17 = arith.constant 0 : index
    %36 = vector.load %arg5[%c0_16, %c0_17] : memref<4x1xf32, #tpu.memory_space<vmem>>, vector<2x1xf32>
    tpu.vector_store %arg5[%c0_16, %c0_17], %27 {strides = array<i32>} : memref<4x1xf32, #tpu.memory_space<vmem>>, vector<2x1xf32>,
    %c2 = arith.constant 2 : index
    %c0_18 = arith.constant 0 : index
    %37 = vector.load %arg5[%c2, %c0_18] : memref<4x1xf32, #tpu.memory_space<vmem>>, vector<2x1xf32>
    tpu.vector_store %arg5[%c2, %c0_18], %35 {strides = array<i32>} : memref<4x1xf32, #tpu.memory_space<vmem>>, vector<2x1xf32>,
    return
  }
  func.func @transform_0(%arg0: i32) -> (i32, i32) {
    %c0_i32 = arith.constant 0 : i32
    %c0_i32_0 = arith.constant 0 : i32
    %c0_i32_1 = arith.constant 0 : i32
    return %c0_i32, %c0_i32_0 : i32, i32
  }
  func.func @transform_1(%arg0: i32) -> (i32, i32) {
    %c0_i32 = arith.constant 0 : i32
    %c0_i32_0 = arith.constant 0 : i32
    %c0_i32_1 = arith.constant 0 : i32
    return %c0_i32, %c0_i32_0 : i32, i32
  }
  func.func @transform_2(%arg0: i32) -> (i32, i32) {
    %c0_i32 = arith.constant 0 : i32
    %c0_i32_0 = arith.constant 0 : i32
    %c0_i32_1 = arith.constant 0 : i32
    return %c0_i32, %c0_i32_0 : i32, i32
  }
  func.func @transform_3(%arg0: i32) -> (i32, i32) {
    %c0_i32 = arith.constant 0 : i32
    %c0_i32_0 = arith.constant 0 : i32
    %c0_i32_1 = arith.constant 0 : i32
    return %c0_i32, %c0_i32_0 : i32, i32
  }
  func.func @transform_4(%arg0: i32) -> (i32, i32) {
    %c0_i32 = arith.constant 0 : i32
    %c0_i32_0 = arith.constant 0 : i32
    %c0_i32_1 = arith.constant 0 : i32
    return %c0_i32, %c0_i32_0 : i32, i32
  }
}

</mosaic_0001>

<bundles_post_ra>
// kernel: neg.2
= control target key start
LH: loop header
LB: loop body
LE: loop exit
PB: predicated region body
PF: predicated region fallthrough
CT: control target
= control target key end

     0   :  { %s72_s0 = inlined_call_operand.vmem [shape: f32[32,32], index: 0, kind: input, shape index: {}]   ;;  %s73_s1 = inlined_call_operand.vmem [shape: f32[32,32], index: 1, kind: output, shape index: {}]  }
   0x1   :  { %v2_v0 = vld [vmem:[%s72_s0] sm:$0xff]  ;;  %v32_v1 = vld [vmem:[%s72_s0 + $0x8] sm:$0xff]  ;;  %v34_v2 = vld [vmem:[%s72_s0 + $0x10] sm:$0xff] }
   0x2   :  { %v5_v3 = vxor.u32 2147483648, %v2_v0  ;;  %v12_v4 = vxor.u32 2147483648, %v32_v1  ;;  %v20_v5 = vxor.u32 2147483648, %v34_v2  ;;  %v36_v6 = vld [vmem:[%s72_s0 + $0x18] sm:$0xff] }
   0x3   :  { %v28_v7 = vxor.u32 2147483648, %v36_v6 }
   0x4   :  { %7 = vst [vmem:[%s73_s1] sm:$0xff] %v5_v3  ;;  %33 = vst [vmem:[%s73_s1 + $0x8] sm:$0xff] %v12_v4 }
   0x5   :  { %35 = vst [vmem:[%s73_s1 + $0x10] sm:$0xff] %v20_v5  ;;  %37 = vst [vmem:[%s73_s1 + $0x18] sm:$0xff] %v28_v7 }

// kernel: _uncertainty_metrics_jit.3
= control target key start
LH: loop header
LB: loop body
LE: loop exit
PB: predicated region body
PF: predicated region fallthrough
CT: control target
= control target key end

     0   :  { %vm25_vm0 = vcmask 261120   ;;  %v252_v2 = vmov 0   ;;  %v179_v13 = vlaneseq  ;;  %s353_s1 = inlined_call_operand.vmem [shape: f32[32,32], index: 1, kind: input, shape index: {}, may-alias: {0,1}]   ;;  %s354_s0 = inlined_call_operand.vmem [shape: f32[32,32], index: 0, kind: input, shape index: {}, may-alias: {0,1}]   ;;  %s355_s2 = inlined_call_operand.vmem [shape: f32[32,1], index: 2, kind: input, shape index: {}]   ;;  %s356_s3 = inlined_call_operand.vmem [shape: f32[1,32], index: 3, kind: input, shape index: {}]   ;;  %s357_s4 = inlined_call_operand.vmem [shape: f32[32,32], index: 4, kind: output, shape index: {}]  }
   0x1   :  { %v24_v0 = vld [vmem:[%s353_s1 + $0x18] sm:$0xff]  ;;  %v23_v1 = vld [vmem:[%s353_s1 + $0x10] sm:$0xff]  ;;  %251 = vset.pattern.permute.xlu1 %v252_v2  ;;  %250 = vset.pattern.permute.xlu0 %v252_v2  ;;  %v17_v3 = vld [vmem:[%s354_s0] sm:$0xff] }
   0x2   :  { %227 = vmatprep.subr.msk.mxu0 %vm25_vm0, %v24_v0  ;;  %241 = vmatprep.subr.msk.mxu1 %vm25_vm0, %v24_v0  ;;  %v19_v4 = vld [vmem:[%s354_s0 + $0x10] sm:$0xff]  ;;  %v135_v6 = vld [vmem:[%s355_s2] sm:$0xff]  ;;  %v22_v7 = vld [vmem:[%s353_s1 + $0x8] sm:$0xff]  ;;  %v180_v16 = vshrl.u32 %v179_v13, 7  ;;  %v191_v21 = vand.u32 127, %v179_v13 }
   0x3   :  { %228 = vmatpush3.xpose.msk.msra.mxu0 %vm25_vm0, %v24_v0  ;;  %245 = vmatpush3.xpose.msk.msra.mxu1 %vm25_vm0, %v24_v0  ;;  %v137_v5 = vld [vmem:[%s355_s2 + $0x10] sm:$0xff]  ;;  %v138_v8 = vld [vmem:[%s355_s2 + $0x18] sm:$0xff]  ;;  %v136_v9 = vld [vmem:[%s355_s2 + $0x8] sm:$0xff] }
   0x4   :  { %229 = vmatprep.subr.msk.mxu0 %vm25_vm0, %v23_v1  ;;  %242 = vmatprep.subr.msk.mxu1 %vm25_vm0, %v23_v1  ;;  %v21_v10 = vld [vmem:[%s353_s1] sm:$0xff]  ;;  %v18_v11 = vld [vmem:[%s354_s0 + $0x8] sm:$0xff]  ;;  %v20_v12 = vld [vmem:[%s354_s0 + $0x18] sm:$0xff]  ;;  %v181_v20 = vadd.s32 8, %v180_v16  ;;  %v183_v22 = vadd.s32 24, %v180_v16  ;;  %v182_v25 = vadd.s32 16, %v180_v16  ;;  %vm194_vm3 = vcmp.eq.s32.totalorder %v180_v16, %v191_v21 }
   0x5   :  { %235 = vmatprep.mubr.msk.f32.mxu0 %vm25_vm0, %v17_v3  ;;  %238 = vmatprep.mubr.msk.f32.mxu1 %vm25_vm0, %v19_v4  ;;  %v218_v17 = vld [vmem:[%s356_s3] ss:$0 sm:$0xff] }
   0x6   :  { %152 = vperm.xlu1 %251, %v137_v5   ;;  %142 = vperm.xlu0 %250, %v135_v6   ;;  %vm195_vm1 = vcmp.eq.s32.totalorder %v181_v20, %v191_v21  ;;  %vm197_vm2 = vcmp.eq.s32.totalorder %v183_v22, %v191_v21  ;;  %vm196_vm4 = vcmp.eq.s32.totalorder %v182_v25, %v191_v21 }
   0x7   :  { %230 = vmatpush3.xpose.msk.msra.mxu0 %vm25_vm0, %v23_v1  ;;  %246 = vmatpush3.xpose.msk.msra.mxu1 %vm25_vm0, %v23_v1 }
   0x8   :  { %231 = vmatprep.subr.msk.mxu0 %vm25_vm0, %v22_v7  ;;  %243 = vmatprep.subr.msk.mxu1 %vm25_vm0, %v22_v7 }
   0xa   :  { %157 = vperm.xlu1 %251, %v138_v8   ;;  %147 = vperm.xlu0 %250, %v136_v9  }
   0xb   :  { %232 = vmatpush3.xpose.msk.msra.mxu0 %vm25_vm0, %v22_v7  ;;  %247 = vmatpush3.xpose.msk.msra.mxu1 %vm25_vm0, %v22_v7 }
   0xc   :  { %233 = vmatprep.subr.msk.mxu0 %vm25_vm0, %v21_v10  ;;  %244 = vmatprep.subr.msk.mxu1 %vm25_vm0, %v21_v10 }
   0xf   :  { %234 = vmatpush3.xpose.msk.msra.mxu0 %vm25_vm0, %v21_v10  ;;  %248 = vmatpush3.xpose.msk.msra.mxu1 %vm25_vm0, %v21_v10 }
  0x12   :  { %236 = vmatmul.mubr.msk.f32.vlgmr.msra.gmra.mxu0 %vm25_vm0, %v18_v11  ;;  %239 = vmatmul.mubr.msk.f32.vlgmr.msra.gmra.mxu1 %vm25_vm0, %v20_v12 }
  0x81   :  { %v153_v14 = vpop.permute.xlu1 %152  ;;  %v143_v15 = vpop.permute.xlu0 %142 }
  0x82   :  { %v168_v30 = vadd.f32 %v218_v17, %v153_v14  ;;  %v166_v31 = vadd.f32 %v218_v17, %v143_v15 }
  0x85   :  { %v158_v18 = vpop.permute.xlu1 %157  ;;  %v148_v19 = vpop.permute.xlu0 %147 }
  0x86   :  { %v169_v26 = vadd.f32 %v218_v17, %v158_v18  ;;  %v167_v27 = vadd.f32 %v218_v17, %v148_v19 }
  0xd2   :  { %v237_v23 = vpop.f32.mrf.mxu0  ;;  %v240_v24 = vpop.f32.mrf.mxu1 }
  0xd3   :  { %v171_v28 = vmul.f32 2.0, %v237_v23  ;;  %v173_v29 = vmul.f32 2.0, %v240_v24 }
  0xd4   :  { %v116_v32 = vpop.f32.mrf.mxu0  ;;  %v126_v33 = vpop.f32.mrf.mxu1 }
  0xd5   :  { %v175_v34 = vsub.f32 %v167_v27, %v171_v28  ;;  %v177_v35 = vsub.f32 %v169_v26, %v173_v29  ;;  %v170_v36 = vmul.f32 2.0, %v116_v32  ;;  %v172_v37 = vmul.f32 2.0, %v126_v33 }
  0xd7   :  { %v199_v38 = vsel %vm195_vm1, inf, %v175_v34  ;;  %v201_v39 = vsel %vm197_vm2, inf, %v177_v35  ;;  %v174_v40 = vsub.f32 %v166_v31, %v170_v36  ;;  %v176_v41 = vsub.f32 %v168_v30, %v172_v37 }
  0xd8   :  { %203 = vst.msk [vmem:[%s357_s4 + $0x8] sm:$0xff] %vm25_vm0, %v199_v38  ;;  %205 = vst.msk [vmem:[%s357_s4 + $0x18] sm:$0xff] %vm25_vm0, %v201_v39 }
  0xd9   :  { %v198_v42 = vsel %vm194_vm3, inf, %v174_v40  ;;  %v200_v43 = vsel %vm196_vm4, inf, %v176_v41 }
  0xda   :  { %202 = vst.msk [vmem:[%s357_s4] sm:$0xff] %vm25_vm0, %v198_v42  ;;  %204 = vst.msk [vmem:[%s357_s4 + $0x10] sm:$0xff] %vm25_vm0, %v200_v43 }

// kernel: neg.3
= control target key start
LH: loop header
LB: loop body
LE: loop exit
PB: predicated region body
PF: predicated region fallthrough
CT: control target
= control target key end

     0   :  { %s24_s0 = inlined_call_operand.vmem [shape: f32[32], index: 0, kind: input, shape index: {}]   ;;  %s25_s1 = inlined_call_operand.vmem [shape: f32[32], index: 1, kind: output, shape index: {}]  }
   0x1   :  { %v2_v0 = vld [vmem:[%s24_s0] sm:$0x1] }
   0x2   :  { %v5_v1 = vxor.u32 2147483648, %v2_v0 }
   0x4   :  { %7 = vst [vmem:[%s25_s1] sm:$0x1] %v5_v1 }

// kernel: _uncertainty_metrics_jit.4
= control target key start
LH: loop header
LB: loop body
LE: loop exit
PB: predicated region body
PF: predicated region fallthrough
CT: control target
= control target key end

     0   :  { %v145_v0 = vmov 0.0   ;;  %vm31_vm0 = vcmask 1046528   ;;  %vm120_vm1 = vcmask 253952   ;;  %vm146_vm2 = vmmov 0   ;;  %s179_s0 = inlined_call_operand.vmem [shape: s32[7,32], index: 0, kind: input, shape index: {}]   ;;  %s180_s1 = inlined_call_operand.vmem [shape: s32[1,32], index: 1, kind: input, shape index: {}]   ;;  %s181_s2 = inlined_call_operand.vmem [shape: f32[3,32], index: 2, kind: output, shape index: {}]  }
   0x1   :  { %136 = vmatprep.subr.mxu0 %v145_v0  ;;  %v11_v1 = vld [vmem:[%s179_s0] sm:$0x7f]  ;;  %138 = vmatprep.mubr.msk.f32.mxu0 %vm146_vm2, %v145_v0  ;;  %v20_v3 = vlaneseq  ;;  %vm27_vm4 = vcmask 56320   ;;  %vm122_vm6 = vcmask 257027   ;;  %vm111_vm7 = vcmask 260096  }
   0x2   :  { %v129_v2 = vld [vmem:[%s180_s1] ss:$0 sm:$0xff] }
   0x3   :  { %vm17_vm3 = vcmp.eq.s32.totalorder %v11_v1, %v129_v2  ;;  %v21_v5 = vshrl.u32 %v20_v3, 7  ;;  %v23_v6 = vand.u32 127, %v20_v3 }
   0x4   :  { %v130_v4 = vsel %vm17_vm3, 1.0, %v145_v0 }
   0x5   :  { %137 = vmatpush3.msk.msra.mxu0 %vm31_vm0, %v130_v4  ;;  %121 = vst.msk [vmem:[%s181_s2] sm:$0x1] %vm120_vm1, %v130_v4  ;;  %vm24_vm5 = vcmp.le.s32.totalorder %v23_v6, %v21_v5  ;;  %v106_v8 = vadd.s32 1, %v21_v5 }
   0x6   :  { %v131_v7 = vsel %vm24_vm5, 1.0, %v145_v0 }
   0x7   :  { %139 = vmatmul.mubr.msk.f32.vlgmr.msra.gmra.mxu0 %vm27_vm4, %v131_v7  ;;  %v107_v9 = vcvt.s32.f32 %v106_v8 }
   0x9   :  { %143 = vrcp.f32 %v107_v9 }
  0x16   :  { %v144_v10 = vpop.eup %143 }
  0xc7   :  { %v101_v11 = vpop.f32.mrf.mxu0 }
  0xc8   :  { %v105_v12 = vmin.f32 %v101_v11, 1.0  ;;  %v109_v13 = vmul.f32 %v144_v10, %v101_v11 }
  0xc9   :  { %v140_v14 = vpop.f32.mrf.mxu0 }
  0xca   :  { %v110_v15 = vmul.f32 %v130_v4, %v109_v13  ;;  %123 = vst.msk [vmem:[%s181_s2 - $0x2] sm:$0x8] %vm122_vm6, %v105_v12 }
  0xcc   :  { %v112_v16 = vsel %vm111_vm7, %v110_v15, 0.0 }
  0xcd   :  { %v113_v17 = vrot.slane %v112_v16, 4 }
  0xcf   :  { %v114_v18 = vadd.f32 %v113_v17, %v112_v16 }
  0xd1   :  { %v115_v19 = vrot.slane %v114_v18, 2 }
  0xd3   :  { %v116_v20 = vadd.f32 %v115_v19, %v114_v18 }
  0xd5   :  { %v117_v21 = vrot.slane %v116_v20, 1 }
  0xd7   :  { %v118_v22 = vadd.f32 %v117_v21, %v116_v20 }
  0xd9   :  { %v119_v23 = vmul.f32 0.14285715, %v118_v22 }
  0xdb   :  { %124 = vst.msk [vmem:[%s181_s2 + $0x2] sm:$0x1] %vm120_vm1, %v119_v23 }

// kernel: _uncertainty_metrics_jit.5
= control target key start
LH: loop header
LB: loop body
LE: loop exit
PB: predicated region body
PF: predicated region fallthrough
CT: control target
= control target key end

     0   :  { %vm19_vm0 = vcmask 254976   ;;  %vm59_vm1 = vcmask 1024   ;;  %s118_s0 = inlined_call_operand.vmem [shape: f32[2,32], index: 0, kind: input, shape index: {}]   ;;  %s119_s1 = inlined_call_operand.vmem [shape: f32[2,32], index: 1, kind: input, shape index: {}]   ;;  %s120_s2 = inlined_call_operand.vmem [shape: f32[2,32], index: 2, kind: input, shape index: {}]   ;;  %s121_s3 = inlined_call_operand.vmem [shape: f32[1,32], index: 3, kind: input, shape index: {}]   ;;  %s122_s4 = inlined_call_operand.vmem [shape: f32[4,1], index: 4, kind: output, shape index: {}]  }
   0x1   :  { %v17_v0 = vld [vmem:[%s118_s0] sm:$0x3] }
   0x2   :  { %v18_v1 = vld [vmem:[%s119_s1] sm:$0x3]  ;;  %v20_v2 = vsel %vm19_vm0, %v17_v0, 0.0 }
   0x3   :  { %21 = vadd.xlane.f32.xlu0 %v20_v2  ;;  %v24_v3 = vsel %vm19_vm0, %v18_v1, 0.0  ;;  %v46_v10 = vld [vmem:[%s120_s2] sm:$0x3] }
   0x4   :  { %v66_v11 = vld [vmem:[%s121_s3] ss:$0 sm:$0xff] }
   0x5   :  { %v54_v16 = vmul.f32 %v66_v11, %v46_v10 }
   0x7   :  { %25 = vadd.xlane.f32.xlu0 %v24_v3  ;;  %v55_v19 = vsel %vm19_vm0, %v54_v16, 0.0 }
  0x8c   :  { %v22_v4 = vpop.xlane.xlu0 %21 }
  0x8d   :  { %v23_v5 = vmul.f32 0.03125, %v22_v4 }
  0x8f   :  { %v28_v6 = vsub.f32 %v17_v0, %v23_v5 }
  0x90   :  { %v26_v7 = vpop.xlane.xlu0 %25 }
  0x91   :  { %v27_v8 = vmul.f32 0.03125, %v26_v7  ;;  %v34_v9 = vmul.f32 %v28_v6, %v28_v6 }
  0x93   :  { %v29_v12 = vsub.f32 %v18_v1, %v27_v8  ;;  %v35_v13 = vsel %vm19_vm0, %v34_v9, 0.0 }
  0x94   :  { %36 = vadd.xlane.f32.xlu1 %v35_v13 }
  0x95   :  { %v38_v14 = vmul.f32 %v29_v12, %v29_v12  ;;  %v30_v15 = vmul.f32 %v29_v12, %v28_v6 }
  0x97   :  { %v39_v17 = vsel %vm19_vm0, %v38_v14, 0.0  ;;  %v31_v18 = vsel %vm19_vm0, %v30_v15, 0.0 }
  0x98   :  { %40 = vadd.xlane.f32.xlu1 %v39_v17  ;;  %32 = vadd.xlane.f32.xlu0 %v31_v18 }
  0x9c   :  { %56 = vadd.xlane.f32.xlu1 %v55_v19 }
 0x11d   :  { %v37_v20 = vpop.xlane.xlu1 %36 }
 0x121   :  { %v41_v21 = vpop.xlane.xlu1 %40  ;;  %v33_v27 = vpop.xlane.xlu0 %32 }
 0x122   :  { %v42_v22 = vmul.f32 %v41_v21, %v37_v20 }
 0x124   :  { %v43_v23 = vadd.f32 1e-12, %v42_v22 }
 0x125   :  { %v57_v24 = vpop.xlane.xlu1 %56 }
 0x126   :  { %67 = vrsqrt.f32 %v43_v23  ;;  %v58_v25 = vmul.f32 0.03125, %v57_v24 }
 0x128   :  { %61 = vst.msk [vmem:[%s122_s4 + $0x2] sm:$0x3] %vm59_vm1, %v58_v25 }
 0x133   :  { %v68_v26 = vpop.eup %67 }
 0x134   :  { %v45_v28 = vmul.f32 %v68_v26, %v33_v27 }
 0x136   :  { %60 = vst.msk [vmem:[%s122_s4] sm:$0x3] %vm59_vm1, %v45_v28 }

</bundles_post_ra>
